<compile_context>
chip_gen: v5e
topology: v5e:2x2
jax: 0.10.0
libtpu: 0.0.40
codegen_flags: <defaults>
</compile_context>

<pallas_src>
import numpy as np
import jax
import jax.numpy as jnp
from jax.experimental import pallas as pl
from jax.experimental.pallas import tpu as pltpu

_F32_TINY = float(np.finfo(np.float32).tiny)  # torch.finfo(torch.float32).tiny


# --------------------------------------------------------------------------- helpers

def _round_up(v, m):
    return ((v + m - 1) // m) * m


def _vmem_capacity_bytes():
    """Generation-aware VMEM capacity; conservative (v7x) fallback if query fails."""
    try:
        cap = getattr(pltpu.get_tpu_info(), "vmem_capacity_bytes", None)
        if cap:
            return int(cap)
    except Exception:
        pass
    return 64 * 1024 * 1024


def _vmem_limit_bytes(cap):
    return int(min(int(0.9 * cap), 120 * 1024 * 1024))


def _choose_row_tile(M, N, itemsize, cap):
    """Pick (tm, M_pad) for the row-reduction kernel.

    Live VMEM per tile row ~= 2 inputs x 2 pipeline buffers x N x itemsize
                              + ~4 tile-sized f32 temporaries in the body.
    """
    per_row = 4 * N * itemsize + 4 * N * 4
    budget = int(0.45 * cap)
    tm = max(8, min(1024, (budget // max(per_row, 1)) // 8 * 8))
    m8 = _round_up(M, 8)
    tm = min(tm, m8)
    if m8 > 8:
        # keep at least 2 grid steps (software pipeline; megacore sharding on v7x)
        tm = min(tm, max(8, (m8 // 2) // 8 * 8))
    if M % 8 == 0:
        # largest multiple-of-8 tile that divides M exactly -> no padding copy at all
        while M % tm != 0:
            tm -= 8
        return tm, M
    # rare ragged case: pad rows up to a tile multiple (padded rows give 0 and are sliced off)
    return tm, _round_up(M, tm)


# --------------------------------------------------------------------------- kernels

def _pearson_row_kernel(x_ref, y_ref, o_ref):
    """Per-row Pearson correlation over the last (lane) axis.

    x_ref, y_ref: (tm, N) tiles in VMEM.  o_ref: (tm, 1) f32.
    """
    x = x_ref[...].astype(jnp.float32)
    y = y_ref[...].astype(jnp.float32)
    inv_n = jnp.float32(1.0 / x.shape[-1])

    mx = jnp.sum(x, axis=-1, keepdims=True) * inv_n
    my = jnp.sum(y, axis=-1, keepdims=True) * inv_n
    xc = x - mx
    yc = y - my

    cov = jnp.sum(xc * yc, axis=-1, keepdims=True) * inv_n
    sx = jnp.sqrt(jnp.sum(xc * xc, axis=-1, keepdims=True) * inv_n)
    sy = jnp.sqrt(jnp.sum(yc * yc, axis=-1, keepdims=True) * inv_n)

    o_ref[...] = cov / jnp.maximum(sx * sy, jnp.float32(_F32_TINY))


def _pearson_col_kernel(x_ref, y_ref, o_ref):
    """Pearson correlation reducing over the sublane axis (nx) of one (1, nx, nt) plane.

    Avoids the wrapper-side XLA transpose for the 3-D (b, nx, nt) layout.
    o_ref: (1, 1, nt) f32.
    """
    x = x_ref[0].astype(jnp.float32)          # (nx, nt)
    y = y_ref[0].astype(jnp.float32)
    inv_n = jnp.float32(1.0 / x.shape[0])

    mx = jnp.sum(x, axis=0, keepdims=True) * inv_n   # (1, nt)
    my = jnp.sum(y, axis=0, keepdims=True) * inv_n
    xc = x - mx
    yc = y - my

    cov = jnp.sum(xc * yc, axis=0, keepdims=True) * inv_n
    sx = jnp.sqrt(jnp.sum(xc * xc, axis=0, keepdims=True) * inv_n)
    sy = jnp.sqrt(jnp.sum(yc * yc, axis=0, keepdims=True) * inv_n)

    o_ref[0] = cov / jnp.maximum(sx * sy, jnp.float32(_F32_TINY))


# --------------------------------------------------------------------------- wrappers

def _pearson_rows(x2d, y2d):
    """x2d, y2d: (M, N). Returns (M,) f32 Pearson correlations per row."""
    M, N = x2d.shape
    cap = _vmem_capacity_bytes()
    tm, M_pad = _choose_row_tile(M, N, x2d.dtype.itemsize, cap)
    if M_pad != M:
        x2d = jnp.pad(x2d, ((0, M_pad - M), (0, 0)))
        y2d = jnp.pad(y2d, ((0, M_pad - M), (0, 0)))
    grid = (M_pad // tm,)

    # TODO(synk): rows wider than ~VMEM_budget/16 would need an N-tiled accumulation pass.
    out = pl.pallas_call(
        _pearson_row_kernel,
        out_shape=jax.ShapeDtypeStruct((M_pad, 1), jnp.float32),
        grid_spec=pltpu.PrefetchScalarGridSpec(
            num_scalar_prefetch=0,
            grid=grid,
            in_specs=[
                pl.BlockSpec((tm, N), lambda i: (i, 0)),
                pl.BlockSpec((tm, N), lambda i: (i, 0)),
            ],
            out_specs=pl.BlockSpec((tm, 1), lambda i: (i, 0)),
        ),
        compiler_params=pltpu.CompilerParams(
            dimension_semantics=("parallel",),
            vmem_limit_bytes=_vmem_limit_bytes(cap),
        ),
    )(x2d, y2d)
    return out[:M, 0]


def _pearson_rows_bt(x, y):
    """x, y: (B, T, ...) already in the module's rearranged layout. Returns (B, T) f32."""
    B, T = x.shape[0], x.shape[1]
    x2 = x.reshape(B * T, -1)
    y2 = y.reshape(B * T, -1)
    return _pearson_rows(x2, y2).reshape(B, T)


def _pearson_3d(x, y):
    """3-D case (b, nx, nt): reduce over nx without materializing the XLA transpose."""
    B, nx, nt = x.shape
    cap = _vmem_capacity_bytes()
    itemsize = x.dtype.itemsize
    # double-buffered inputs + ~5 plane-sized f32 temporaries
    need = 4 * nx * nt * itemsize + 5 * nx * nt * 4
    if need <= int(0.45 * cap):
        out = pl.pallas_call(
            _pearson_col_kernel,
            out_shape=jax.ShapeDtypeStruct((B, 1, nt), jnp.float32),
            grid_spec=pltpu.PrefetchScalarGridSpec(
                num_scalar_prefetch=0,
                grid=(B,),
                in_specs=[
                    pl.BlockSpec((1, nx, nt), lambda b: (b, 0, 0)),
                    pl.BlockSpec((1, nx, nt), lambda b: (b, 0, 0)),
                ],
                out_specs=pl.BlockSpec((1, 1, nt), lambda b: (b, 0, 0)),
            ),
            compiler_params=pltpu.CompilerParams(
                dimension_semantics=("parallel",),
                vmem_limit_bytes=_vmem_limit_bytes(cap),
            ),
        )(x, y)
        return out[:, 0, :]
    # TODO(synk): when one (nx, nt) plane exceeds the VMEM budget, fall back to an
    # explicit transpose + row-reduction kernel (costs one extra HBM round trip).
    xt = jnp.transpose(x, (0, 2, 1)).reshape(B * nt, nx)
    yt = jnp.transpose(y, (0, 2, 1)).reshape(B * nt, nx)
    return _pearson_rows(xt, yt).reshape(B, nt)


def pearson_correlation(inp, tgt, reduce_batch: bool = False):
    """Functional API matching the PyTorch free function (inputs already rearranged)."""
    corr = _pearson_rows_bt(inp, tgt)
    if reduce_batch:
        corr = jnp.mean(corr, axis=0)
    return jnp.squeeze(corr)


class PearsonCorrelationScore:
    """Pearson Correlation Score for PDEs (no learnable parameters)."""

    def __init__(self, channel=None, reduce_batch: bool = False):
        self.channel = channel
        self.reduce_batch = reduce_batch

    def __call__(self, input, target):
        if self.channel is not None:
            input = input[:, :, self.channel]
            target = target[:, :, self.channel]

        if input.ndim == 3:
            # 'b nx nt -> b nt nx' is folded into the kernel (sublane reduction),
            # so no XLA transpose / extra HBM round trip here.
            corr = _pearson_3d(input, target)
        elif input.ndim == 4:
            if input.shape[-1] != 1:
                # b nx ny c -> b 1 nx ny c (pure reshape, contiguous reduction)
                corr = _pearson_rows_bt(input[:, None], target[:, None])
            else:
                # b nx ny nt -> b nt nx ny with nt == 1: moving a size-1 axis is free.
                corr = _pearson_rows_bt(jnp.transpose(input, (0, 3, 1, 2)),
                                        jnp.transpose(target, (0, 3, 1, 2)))
        else:
            corr = _pearson_rows_bt(input, target)

        if self.reduce_batch:
            corr = jnp.mean(corr, axis=0)
        return jnp.squeeze(corr)


# --------------------------------------------------------------------------- reference

def _reference(input, target, channel=None, reduce_batch=False):
    """Pure-jnp reference mirroring the PyTorch module."""
    if channel is not None:
        input = input[:, :, channel]
        target = target[:, :, channel]
    if input.ndim == 3:
        input = jnp.transpose(input, (0, 2, 1))
        target = jnp.transpose(target, (0, 2, 1))
    elif input.ndim == 4:
        if input.shape[-1] != 1:
            input = input[:, None]
            target = target[:, None]
        else:
            input = jnp.transpose(input, (0, 3, 1, 2))
            target = jnp.transpose(target, (0, 3, 1, 2))
    B, T = input.shape[0], input.shape[1]
    x = input.reshape(B, T, -1).astype(jnp.float32)
    y = target.reshape(B, T, -1).astype(jnp.float32)
    mx = jnp.mean(x, axis=2, keepdims=True)
    my = jnp.mean(y, axis=2, keepdims=True)
    sx = jnp.sqrt(jnp.mean((x - mx) ** 2, axis=2))
    sy = jnp.sqrt(jnp.mean((y - my) ** 2, axis=2))
    corr = jnp.mean((x - mx) * (y - my), axis=2) / jnp.maximum(sx * sy, _F32_TINY)
    if reduce_batch:
        corr = jnp.mean(corr, axis=0)
    return jnp.squeeze(corr)


if __name__ == "__main__":
    key = jax.random.PRNGKey(0)
    k1, k2, k3, k4 = jax.random.split(key, 4)

    # Case 1: 3-D (b, nx, nt) — exercised via the no-transpose sublane-reduction kernel.
    b, nx, nt = 2, 128, 8
    inp3 = jax.random.normal(k1, (b, nx, nt), dtype=jnp.float32)
    tgt3 = 0.7 * inp3 + 0.3 * jax.random.normal(k2, (b, nx, nt), dtype=jnp.float32)

    out3 = jax.block_until_ready(PearsonCorrelationScore()(inp3, tgt3))
    ref3 = _reference(inp3, tgt3)
    np.testing.assert_allclose(np.asarray(out3), np.asarray(ref3), rtol=1e-5, atol=1e-6)
    assert out3.shape == (b, nt), out3.shape

    out3r = jax.block_until_ready(PearsonCorrelationScore(reduce_batch=True)(inp3, tgt3))
    ref3r = _reference(inp3, tgt3, reduce_batch=True)
    np.testing.assert_allclose(np.asarray(out3r), np.asarray(ref3r), rtol=1e-5, atol=1e-6)
    assert out3r.shape == (nt,), out3r.shape

    # Case 2: 4-D (b, nx, ny, c), c != 1 — exercised via the row-reduction kernel (T == 1).
    b2, h, w, c = 2, 16, 16, 4
    inp4 = jax.random.normal(k3, (b2, h, w, c), dtype=jnp.float32)
    tgt4 = 0.5 * inp4 + 0.5 * jax.random.normal(k4, (b2, h, w, c), dtype=jnp.float32)

    out4 = jax.block_until_ready(PearsonCorrelationScore()(inp4, tgt4))
    ref4 = _reference(inp4, tgt4)
    np.testing.assert_allclose(np.asarray(out4), np.asarray(ref4), rtol=1e-5, atol=1e-6)
    assert out4.shape == (b2,), out4.shape

    print("KERNEL_OK")
</pallas_src>

<mosaic_0001>
module attributes {stable_mosaic.version = 11 : i64} {
  func.func @_pearson_col_kernel(%arg0: i32, %arg1: memref<1x128x8xf32, #tpu.memory_space<vmem>>, %arg2: memref<1x128x8xf32, #tpu.memory_space<vmem>>, %arg3: memref<1x1x8xf32, #tpu.memory_space<vmem>>) attributes {dimension_semantics = [#tpu.dimension_semantics<parallel>], iteration_bounds = array<i64: 2>, scalar_prefetch = 0 : i64, scratch_operands = 0 : i64, tpu.core_type = #tpu.core_type<tc>, window_params = [{transform_indices = @transform_0, window_bounds = array<i64: 1, 128, 8>}, {transform_indices = @transform_1, window_bounds = array<i64: 1, 128, 8>}, {transform_indices = @transform_2, window_bounds = array<i64: 1, 1, 8>}]} {
    %c0 = arith.constant 0 : index
    %c0_0 = arith.constant 0 : index
    %c0_1 = arith.constant 0 : index
    %0 = vector.load %arg1[%c0, %c0_0, %c0_1] : memref<1x128x8xf32, #tpu.memory_space<vmem>>, vector<1x128x8xf32>
    %1 = vector.shape_cast %0 : vector<1x128x8xf32> to vector<128x8xf32>
    %c0_2 = arith.constant 0 : index
    %c0_3 = arith.constant 0 : index
    %c0_4 = arith.constant 0 : index
    %2 = vector.load %arg2[%c0_2, %c0_3, %c0_4] : memref<1x128x8xf32, #tpu.memory_space<vmem>>, vector<1x128x8xf32>
    %3 = vector.shape_cast %2 : vector<1x128x8xf32> to vector<128x8xf32>
    %cst = arith.constant dense<0.000000e+00> : vector<8xf32>
    %4 = vector.multi_reduction <add>, %1, %cst [0] : vector<128x8xf32> to vector<8xf32>
    %5 = vector.shape_cast %4 : vector<8xf32> to vector<1x8xf32>
    %cst_5 = arith.constant 7.812500e-03 : f32
    %6 = vector.broadcast %cst_5 : f32 to vector<1x8xf32>
    %7 = arith.mulf %5, %6 : vector<1x8xf32>
    %cst_6 = arith.constant dense<0.000000e+00> : vector<8xf32>
    %8 = vector.multi_reduction <add>, %3, %cst_6 [0] : vector<128x8xf32> to vector<8xf32>
    %9 = vector.shape_cast %8 : vector<8xf32> to vector<1x8xf32>
    %cst_7 = arith.constant 7.812500e-03 : f32
    %10 = vector.broadcast %cst_7 : f32 to vector<1x8xf32>
    %11 = arith.mulf %9, %10 : vector<1x8xf32>
    %12 = vector.broadcast %7 : vector<1x8xf32> to vector<128x8xf32>
    %13 = arith.subf %1, %12 : vector<128x8xf32>
    %14 = vector.broadcast %11 : vector<1x8xf32> to vector<128x8xf32>
    %15 = arith.subf %3, %14 : vector<128x8xf32>
    %16 = arith.mulf %13, %15 : vector<128x8xf32>
    %cst_8 = arith.constant dense<0.000000e+00> : vector<8xf32>
    %17 = vector.multi_reduction <add>, %16, %cst_8 [0] : vector<128x8xf32> to vector<8xf32>
    %18 = vector.shape_cast %17 : vector<8xf32> to vector<1x8xf32>
    %cst_9 = arith.constant 7.812500e-03 : f32
    %19 = vector.broadcast %cst_9 : f32 to vector<1x8xf32>
    %20 = arith.mulf %18, %19 : vector<1x8xf32>
    %21 = arith.mulf %13, %13 : vector<128x8xf32>
    %cst_10 = arith.constant dense<0.000000e+00> : vector<8xf32>
    %22 = vector.multi_reduction <add>, %21, %cst_10 [0] : vector<128x8xf32> to vector<8xf32>
    %23 = vector.shape_cast %22 : vector<8xf32> to vector<1x8xf32>
    %cst_11 = arith.constant 7.812500e-03 : f32
    %24 = vector.broadcast %cst_11 : f32 to vector<1x8xf32>
    %25 = arith.mulf %23, %24 : vector<1x8xf32>
    %26 = math.sqrt %25 : vector<1x8xf32>
    %27 = arith.mulf %15, %15 : vector<128x8xf32>
    %cst_12 = arith.constant dense<0.000000e+00> : vector<8xf32>
    %28 = vector.multi_reduction <add>, %27, %cst_12 [0] : vector<128x8xf32> to vector<8xf32>
    %29 = vector.shape_cast %28 : vector<8xf32> to vector<1x8xf32>
    %cst_13 = arith.constant 7.812500e-03 : f32
    %30 = vector.broadcast %cst_13 : f32 to vector<1x8xf32>
    %31 = arith.mulf %29, %30 : vector<1x8xf32>
    %32 = math.sqrt %31 : vector<1x8xf32>
    %33 = arith.mulf %26, %32 : vector<1x8xf32>
    %cst_14 = arith.constant 1.17549435E-38 : f32
    %34 = vector.broadcast %cst_14 : f32 to vector<1x8xf32>
    %35 = arith.maximumf %33, %34 : vector<1x8xf32>
    %36 = arith.divf %20, %35 : vector<1x8xf32>
    %c0_15 = arith.constant 0 : index
    %c0_16 = arith.constant 0 : index
    %c0_17 = arith.constant 0 : index
    %37 = vector.load %arg3[%c0_15, %c0_16, %c0_17] : memref<1x1x8xf32, #tpu.memory_space<vmem>>, vector<1x1x8xf32>
    %38 = vector.shape_cast %37 : vector<1x1x8xf32> to vector<1x8xf32>
    %39 = vector.shape_cast %36 : vector<1x8xf32> to vector<1x1x8xf32>
    tpu.vector_store %arg3[%c0_15, %c0_16, %c0_17], %39 {strides = array<i32>} : memref<1x1x8xf32, #tpu.memory_space<vmem>>, vector<1x1x8xf32>,
    return
  }
  func.func @transform_0(%arg0: i32) -> (i32, i32, i32) {
    %c0_i32 = arith.constant 0 : i32
    %c0_i32_0 = arith.constant 0 : i32
    %c0_i32_1 = arith.constant 0 : i32
    return %arg0, %c0_i32, %c0_i32_0 : i32, i32, i32
  }
  func.func @transform_1(%arg0: i32) -> (i32, i32, i32) {
    %c0_i32 = arith.constant 0 : i32
    %c0_i32_0 = arith.constant 0 : i32
    %c0_i32_1 = arith.constant 0 : i32
    return %arg0, %c0_i32, %c0_i32_0 : i32, i32, i32
  }
  func.func @transform_2(%arg0: i32) -> (i32, i32, i32) {
    %c0_i32 = arith.constant 0 : i32
    %c0_i32_0 = arith.constant 0 : i32
    %c0_i32_1 = arith.constant 0 : i32
    return %arg0, %c0_i32, %c0_i32_0 : i32, i32, i32
  }
}

</mosaic_0001>

<bundles_post_ra>
// kernel: tpu_custom_call.1
= control target key start
LH: loop header
LB: loop body
LE: loop exit
PB: predicated region body
PF: predicated region fallthrough
CT: control target
= control target key end

     0   :  { %7 = vsyncpa [#allocation3], 0  ;;  %s1153_s0 = inlined_call_operand.vmem [shape: f32[2,128,8], index: 0, kind: input, shape index: {}]   ;;  %s1154_s1 = inlined_call_operand.vmem [shape: f32[2,128,8], index: 1, kind: input, shape index: {}]   ;;  %s1155_s2 = inlined_call_operand.hbm [shape: f32[2,1,8], index: 2, kind: output, shape index: {}]  }
   0x1   :  { %9 = vsyncpa [#allocation3 + $0x1], 0  ;;  %s723_s9 = smov 0   ;;  %s725_s10 = smov 0  }
   0x2   :  { %s727_s11 = smov 0   ;;  %s729_s12 = smov 0  }
   0x3 LB: > { %s744_s13 = sadd.s32 4294967295, %s706_s12   ;;  %s587_s14 = sadd.s32 4294967294, %s706_s12   ;;  %s706_s12 = sphi %s729_s12, %s1161_s12   ;;  %s702_s11 = sphi %s727_s11, %s1160_s11   ;;  %s698_s10 = sphi %s725_s10, %s1159_s10   ;;  %s694_s9 = sphi %s723_s9, %s1158_s9  }
   0x4   : > { %s748_s15 = sadd.s32 1, %s706_s12   ;;  %s74_s16 = sadd.s32 1, %s702_s11 }
   0x5   : > { %s71_s17 = ssub.s32 %s706_s12, %s748_s15  ;;  %p84_p0 = scmp.ne.s32.totalorder %s702_s11, %s698_s10 }
   0x6   : > { %p72_p1 = scmp.eq.s32.totalorder %s71_s17, 0  ;;  %p85_p2 = scmp.eq.s32.totalorder %s744_s13, 1 }
   0x7   : > { %p90_p3 = scmp.ne.s32.totalorder %s698_s10, %s694_s9  ;;  %p91_p4 = scmp.eq.s32.totalorder %s587_s14, 1 }
   0x8   : > { %s759_s18 = scalar_select %p72_p1, %s702_s11, %s74_s16  }
   0x9   : > { %p761_p5 = por %p85_p2, %p84_p0  ;;  %p765_p6 = por %p91_p4, %p90_p3 }
   0xa   : > { %p590_p7 = scmp.ge.s32.totalorder %s706_s12, 1  ;;  %p125_p8 = scmp.lt.s32.totalorder %s706_s12, 3 }
   0xc   : > { %p126_p9 = pnand %p590_p7, %p125_p8 }
   0xd   : > { %p151_p10 = scmp.lt.s32.totalorder (!%p126_p9), %s744_s13, 1  ;;  %s149_s29 = sand.u32 (!%p126_p9), 1, %s698_s10  }
   0xe   : > { %129 = sbr.rel (%p126_p9) target bundleno = 177 (0xb1), region = 28  ;;  %s516_s4 = scalar_lea.hbm (!%p126_p9), %s1155_s2, %s744_s13 }
   0xf   : > { %s150_s5 = scalar_lea.vmem (!%p126_p9), [#allocation2], %s149_s29  ;;  %s520_s7 = sshll.u32 (!%p126_p9), %s516_s4, 4  ;;  %s521_s7 = int_to_ptr.hbm [resolvable:$true] %s520_s7 }
  0x10   : > { %s518_s6 = sshll.u32 (!%p126_p9), %s150_s5, 4  ;;  %s508_s8 = scalar_lea.sflag (!%p126_p9), [#allocation3], %s149_s29  ;;  %s519_s6 = int_to_ptr.vmem [resolvable:$true] %s518_s6 }
  0x11   : > { %s658_s14 = sshra.s32 (!%p126_p9), %s521_s7, 4  ;;  %s659_s14 = int_to_ptr.hbm [resolvable:$true] %s658_s14 }
  0x12   : > { %p665_p0 = scmp.lt.s32.totalorder (!%p126_p9), %s659_s14, %s1155_s2 }
  0x13   : > { %s152_s21 = scalar_select %p151_p10, %s744_s13, 1  ;;  %vm193_vm0 = vcmask 64512   ;;  %vm505_vm9 = vcmask 57344  }
  0x14   : > { %s660_s13 = scalar_lea.hbm %s659_s14, 1 }
  0x15   : > { %s597_s22 = sshll.u32 %s152_s21, 7  ;;  %p661_p11 = scmp.ne.s32.totalorder %s659_s14, %s660_s13 }
  0x16   : > { %s776_s25 = scalar_lea.vmem %s1153_s0, %s597_s22  ;;  %s799_s28 = scalar_lea.vmem %s1154_s1, %s597_s22 }
  0x17   : > { %v779_v0 = vld [vmem:[%s776_s25] sm:$0xff]  ;;  %v782_v1 = vld [vmem:[%s776_s25 + $0x8] sm:$0xff]  ;;  %v785_v2 = vld [vmem:[%s776_s25 + $0x10] sm:$0xff]  ;;  %p662_p12 = pnand %p661_p11, %p761_p5  ;;  %s664_s21 = scalar_lea.hbm %s1155_s2, 2 }
  0x18   : > { %v788_v3 = vld [vmem:[%s776_s25 + $0x18] sm:$0xff]  ;;  %v194_v4 = vsel %vm193_vm0, %v779_v0, 0.0  ;;  %v195_v5 = vsel %vm193_vm0, %v782_v1, 0.0  ;;  %v197_v6 = vsel %vm193_vm0, %v785_v2, 0.0  ;;  %v802_v7 = vld [vmem:[%s776_s25 + $0x20] sm:$0xff]  ;;  %v807_v10 = vld [vmem:[%s776_s25 + $0x28] sm:$0xff]  ;;  %p666_p1 = scmp.lt.s32.totalorder %s664_s21, %s660_s13 }
  0x19   : > { %v196_v8 = vadd.f32 %v195_v5, %v194_v4  ;;  %v199_v9 = vsel %vm193_vm0, %v788_v3, 0.0  ;;  %v810_v12 = vld [vmem:[%s799_s28] sm:$0xff]  ;;  %v813_v13 = vld [vmem:[%s799_s28 + $0x8] sm:$0xff]  ;;  %v201_v14 = vsel %vm193_vm0, %v802_v7, 0.0  ;;  %v818_v15 = vld [vmem:[%s776_s25 + $0x30] sm:$0xff]  ;;  %v203_v22 = vsel %vm193_vm0, %v807_v10, 0.0  ;;  %p663_p13 = pneg %p662_p12 }
  0x1a   : > { %v821_v16 = vld [vmem:[%s799_s28 + $0x10] sm:$0xff]  ;;  %v824_v17 = vld [vmem:[%s799_s28 + $0x18] sm:$0xff]  ;;  %v232_v19 = vsel %vm193_vm0, %v810_v12, 0.0  ;;  %v233_v20 = vsel %vm193_vm0, %v813_v13, 0.0  ;;  %v831_v21 = vld [vmem:[%s799_s28 + $0x20] sm:$0xff]  ;;  %v205_v29 = vsel %vm193_vm0, %v818_v15, 0.0  ;;  %p667_p2 = por %p666_p1, %p665_p0 }
  0x1b   : > { %v198_v11 = vadd.f32 %v197_v6, %v196_v8  ;;  %v234_v23 = vadd.f32 %v233_v20, %v232_v19  ;;  %v235_v24 = vsel %vm193_vm0, %v821_v16, 0.0  ;;  %v838_v25 = vld [vmem:[%s776_s25 + $0x38] sm:$0xff]  ;;  %v237_v27 = vsel %vm193_vm0, %v824_v17, 0.0  ;;  %v843_v28 = vld [vmem:[%s799_s28 + $0x28] sm:$0xff]  ;;  %v848_v31 = vld [vmem:[%s776_s25 + $0x40] sm:$0xff] }
  0x1c   : > { %v239_v33 = vsel %vm193_vm0, %v831_v21, 0.0  ;;  %v853_v34 = vld [vmem:[%s799_s28 + $0x30] sm:$0xff]  ;;  %v207_v35 = vsel %vm193_vm0, %v838_v25, 0.0  ;;  %v858_v37 = vld [vmem:[%s776_s25 + $0x48] sm:$0xff]  ;;  %v241_v39 = vsel %vm193_vm0, %v843_v28, 0.0  ;;  %v863_v40 = vld [vmem:[%s799_s28 + $0x38] sm:$0xff]  ;;  %p668_p3 = pnand %p667_p2, %p663_p13 }
  0x1d   : > { %v200_v18 = vadd.f32 %v199_v9, %v198_v11  ;;  %v236_v30 = vadd.f32 %v235_v24, %v234_v23  ;;  %v209_v41 = vsel %vm193_vm0, %v848_v31, 0.0  ;;  %v868_v43 = vld [vmem:[%s776_s25 + $0x50] sm:$0xff]  ;;  %v243_v45 = vsel %vm193_vm0, %v853_v34, 0.0  ;;  %v873_v46 = vld [vmem:[%s799_s28 + $0x40] sm:$0xff]  ;;  %v878_v49 = vld [vmem:[%s776_s25 + $0x58] sm:$0xff] }
  0x1e   : > { %v211_v47 = vsel %vm193_vm0, %v858_v37, 0.0  ;;  %v245_v51 = vsel %vm193_vm0, %v863_v40, 0.0  ;;  %v883_v52 = vld [vmem:[%s799_s28 + $0x48] sm:$0xff]  ;;  %v213_v53 = vsel %vm193_vm0, %v868_v43, 0.0  ;;  %v888_v55 = vld [vmem:[%s776_s25 + $0x60] sm:$0xff]  ;;  %v247_v57 = vsel %vm193_vm0, %v873_v46, 0.0 }
  0x1f   : > { %v202_v26 = vadd.f32 %v201_v14, %v200_v18  ;;  %v238_v36 = vadd.f32 %v237_v27, %v236_v30  ;;  %v893_v58 = vld [vmem:[%s799_s28 + $0x50] sm:$0xff]  ;;  %v215_v59 = vsel %vm193_vm0, %v878_v49, 0.0  ;;  %v898_v61 = vld [vmem:[%s776_s25 + $0x68] sm:$0xff]  ;;  %v249_v63 = vsel %vm193_vm0, %v883_v52, 0.0  ;;  %v903_v4 = vld [vmem:[%s799_s28 + $0x58] sm:$0xff] }
  0x20   : > { %v217_v5 = vsel %vm193_vm0, %v888_v55, 0.0  ;;  %v908_v8 = vld [vmem:[%s776_s25 + $0x70] sm:$0xff]  ;;  %v251_v11 = vsel %vm193_vm0, %v893_v58, 0.0  ;;  %v913_v14 = vld [vmem:[%s799_s28 + $0x60] sm:$0xff]  ;;  %v219_v18 = vsel %vm193_vm0, %v898_v61, 0.0  ;;  %v918_v20 = vld [vmem:[%s776_s25 + $0x78] sm:$0xff] }
  0x21   : > { %v204_v32 = vadd.f32 %v203_v22, %v202_v26  ;;  %v240_v42 = vadd.f32 %v239_v33, %v238_v36  ;;  %v253_v23 = vsel %vm193_vm0, %v903_v4, 0.0  ;;  %v923_v24 = vld [vmem:[%s799_s28 + $0x68] sm:$0xff]  ;;  %v221_v26 = vsel %vm193_vm0, %v908_v8, 0.0 }
  0x22   : > { %v255_v30 = vsel %vm193_vm0, %v913_v14, 0.0  ;;  %v223_v33 = vsel %vm193_vm0, %v918_v20, 0.0 }
  0x23   : > { %v206_v38 = vadd.f32 %v205_v29, %v204_v32  ;;  %v242_v48 = vadd.f32 %v241_v39, %v240_v42  ;;  %v930_v32 = vld [vmem:[%s799_s28 + $0x70] sm:$0xff]  ;;  %v937_v39 = vld [vmem:[%s799_s28 + $0x78] sm:$0xff] }
  0x25   : > { %v208_v44 = vadd.f32 %v207_v35, %v206_v38  ;;  %v244_v54 = vadd.f32 %v243_v45, %v242_v48  ;;  %v257_v38 = vsel %vm193_vm0, %v923_v24, 0.0  ;;  %v261_v48 = vsel %vm193_vm0, %v937_v39, 0.0 }
  0x27   : > { %v210_v50 = vadd.f32 %v209_v41, %v208_v44  ;;  %v246_v60 = vadd.f32 %v245_v51, %v244_v54  ;;  %v259_v44 = vsel %vm193_vm0, %v930_v32, 0.0 }
  0x29   : > { %v212_v56 = vadd.f32 %v211_v47, %v210_v50  ;;  %v248_v6 = vadd.f32 %v247_v57, %v246_v60 }
  0x2b   : > { %v214_v62 = vadd.f32 %v213_v53, %v212_v56  ;;  %v250_v19 = vadd.f32 %v249_v63, %v248_v6 }
  0x2d   : > { %v216_v9 = vadd.f32 %v215_v59, %v214_v62  ;;  %v252_v27 = vadd.f32 %v251_v11, %v250_v19 }
  0x2f   : > { %v218_v22 = vadd.f32 %v217_v5, %v216_v9  ;;  %v254_v35 = vadd.f32 %v253_v23, %v252_v27 }
  0x31   : > { %v220_v29 = vadd.f32 %v219_v18, %v218_v22  ;;  %v256_v41 = vadd.f32 %v255_v30, %v254_v35 }
  0x33   : > { %v222_v36 = vadd.f32 %v221_v26, %v220_v29  ;;  %v258_v45 = vadd.f32 %v257_v38, %v256_v41 }
  0x35   : > { %v224_v42 = vadd.f32 %v223_v33, %v222_v36  ;;  %v260_v50 = vadd.f32 %v259_v44, %v258_v45 }
  0x37   : > { %v225_v47 = vrot.slane %v224_v42, 4  ;;  %v262_v53 = vadd.f32 %v261_v48, %v260_v50 }
  0x39   : > { %v226_v51 = vadd.f32 %v225_v47, %v224_v42  ;;  %v263_v54 = vrot.slane %v262_v53, 4 }
  0x3b   : > { %v227_v56 = vrot.slane %v226_v51, 2  ;;  %v264_v57 = vadd.f32 %v263_v54, %v262_v53 }
  0x3d   : > { %v228_v59 = vadd.f32 %v227_v56, %v226_v51  ;;  %v265_v60 = vrot.slane %v264_v57, 2 }
  0x3f   : > { %v229_v62 = vrot.slane %v228_v59, 1  ;;  %v266_v63 = vadd.f32 %v265_v60, %v264_v57 }
  0x41   : > { %v230_v5 = vadd.f32 %v229_v62, %v228_v59  ;;  %v267_v6 = vrot.slane %v266_v63, 1 }
  0x43   : > { %v231_v9 = vmul.f32 0.0078125, %v230_v5  ;;  %v268_v11 = vadd.f32 %v267_v6, %v266_v63 }
  0x45   : > { %v270_v18 = vsub.f32 %v779_v0, %v231_v9  ;;  %v271_v19 = vsub.f32 %v782_v1, %v231_v9  ;;  %v272_v22 = vsub.f32 %v785_v2, %v231_v9  ;;  %v273_v23 = vsub.f32 %v788_v3, %v231_v9 }
  0x46   : > { %v947_v26 = vmul.f32 0.0078125, %v268_v11  ;;  %v274_v27 = vsub.f32 %v802_v7, %v231_v9  ;;  %v951_v33 = vsub.f32 %v807_v10, %v231_v9  ;;  %v954_v35 = vsub.f32 %v818_v15, %v231_v9 }
  0x47   : > { %v356_v29 = vmul.f32 %v270_v18, %v270_v18  ;;  %v357_v30 = vmul.f32 %v271_v19, %v271_v19  ;;  %v358_v36 = vmul.f32 %v272_v22, %v272_v22  ;;  %v957_v0 = vsub.f32 %v838_v25, %v231_v9 }
  0x48   : > { %v960_v1 = vsub.f32 %v848_v31, %v231_v9  ;;  %v963_v2 = vsub.f32 %v858_v37, %v231_v9  ;;  %v359_v3 = vmul.f32 %v273_v23, %v273_v23  ;;  %v966_v7 = vsub.f32 %v868_v43, %v231_v9 }
  0x49   : > { %v969_v10 = vsub.f32 %v878_v49, %v231_v9  ;;  %v972_v15 = vsub.f32 %v888_v55, %v231_v9  ;;  %v286_v25 = vsub.f32 %v810_v12, %v947_v26  ;;  %v287_v31 = vsub.f32 %v813_v13, %v947_v26 }
  0x4a   : > { %v360_v38 = vmul.f32 %v274_v27, %v274_v27  ;;  %v372_v37 = vsel %vm193_vm0, %v356_v29, 0.0  ;;  %v373_v41 = vsel %vm193_vm0, %v357_v30, 0.0  ;;  %v981_v43 = vsub.f32 %v898_v61, %v231_v9 }
  0x4b   : > { %v984_v49 = vsub.f32 %v908_v8, %v231_v9  ;;  %v374_v42 = vadd.f32 %v373_v41, %v372_v37  ;;  %v375_v55 = vsel %vm193_vm0, %v358_v36, 0.0  ;;  %v302_v44 = vmul.f32 %v286_v25, %v270_v18 }
  0x4c   : > { %v303_v45 = vmul.f32 %v287_v31, %v271_v19  ;;  %v361_v12 = vmul.f32 %v951_v33, %v951_v33  ;;  %v377_v13 = vsel %vm193_vm0, %v359_v3, 0.0  ;;  %v991_v47 = vsub.f32 %v918_v20, %v231_v9 }
  0x4d   : > { %v288_v61 = vsub.f32 %v821_v16, %v947_v26  ;;  %v289_v8 = vsub.f32 %v824_v17, %v947_v26  ;;  %v376_v48 = vadd.f32 %v375_v55, %v374_v42  ;;  %v290_v50 = vsub.f32 %v831_v21, %v947_v26 }
  0x4e   : > { %v291_v51 = vsub.f32 %v843_v28, %v947_v26  ;;  %v362_v53 = vmul.f32 %v954_v35, %v954_v35  ;;  %v379_v54 = vsel %vm193_vm0, %v360_v38, 0.0  ;;  %v292_v20 = vsub.f32 %v853_v34, %v947_v26 }
  0x4f   : > { %v1008_v16 = vsub.f32 %v863_v40, %v947_v26  ;;  %v304_v17 = vmul.f32 %v288_v61, %v272_v22  ;;  %v378_v56 = vadd.f32 %v377_v13, %v376_v48  ;;  %v318_v57 = vsel %vm193_vm0, %v302_v44, 0.0 }
  0x50   : > { %v319_v21 = vsel %vm193_vm0, %v303_v45, 0.0  ;;  %v363_v28 = vmul.f32 %v957_v0, %v957_v0  ;;  %v381_v59 = vsel %vm193_vm0, %v361_v12, 0.0  ;;  %v1017_v60 = vsub.f32 %v873_v46, %v947_v26 }
  0x51   : > { %v380_v34 = vadd.f32 %v379_v54, %v378_v56  ;;  %v422_v62 = vmul.f32 %v286_v25, %v286_v25  ;;  %v423_v63 = vmul.f32 %v287_v31, %v287_v31  ;;  %v1021_v40 = vsub.f32 %v883_v52, %v947_v26 }
  0x52   : > { %v364_v5 = vmul.f32 %v960_v1, %v960_v1  ;;  %v383_v6 = vsel %vm193_vm0, %v362_v53, 0.0  ;;  %v424_v9 = vmul.f32 %v288_v61, %v288_v61  ;;  %v305_v11 = vmul.f32 %v289_v8, %v273_v23 }
  0x53   : > { %v320_v18 = vadd.f32 %v319_v21, %v318_v57  ;;  %v382_v19 = vadd.f32 %v381_v59, %v380_v34  ;;  %v425_v22 = vmul.f32 %v289_v8, %v289_v8  ;;  %v306_v29 = vmul.f32 %v290_v50, %v274_v27 }
  0x54   : > { %v321_v46 = vsel %vm193_vm0, %v304_v17, 0.0  ;;  %v365_v30 = vmul.f32 %v963_v2, %v963_v2  ;;  %v385_v36 = vsel %vm193_vm0, %v363_v28, 0.0  ;;  %v426_v3 = vmul.f32 %v290_v50, %v290_v50 }
  0x55   : > { %v384_v52 = vadd.f32 %v383_v6, %v382_v19  ;;  %v438_v25 = vsel %vm193_vm0, %v422_v62, 0.0  ;;  %v439_v31 = vsel %vm193_vm0, %v423_v63, 0.0  ;;  %v366_v23 = vmul.f32 %v966_v7, %v966_v7 }
  0x56   : > { %v387_v38 = vsel %vm193_vm0, %v364_v5, 0.0  ;;  %v440_v37 = vadd.f32 %v439_v31, %v438_v25  ;;  %v441_v27 = vsel %vm193_vm0, %v424_v9, 0.0  ;;  %v322_v41 = vadd.f32 %v321_v46, %v320_v18 }
  0x57   : > { %v386_v42 = vadd.f32 %v385_v36, %v384_v52  ;;  %v427_v55 = vmul.f32 %v291_v51, %v291_v51  ;;  %v443_v44 = vsel %vm193_vm0, %v425_v22, 0.0  ;;  %v323_v45 = vsel %vm193_vm0, %v305_v11, 0.0 }
  0x58   : > { %v367_v12 = vmul.f32 %v969_v10, %v969_v10  ;;  %v389_v13 = vsel %vm193_vm0, %v365_v30, 0.0  ;;  %v442_v61 = vadd.f32 %v441_v27, %v440_v37  ;;  %v1043_v8 = vsub.f32 %v893_v58, %v947_v26 }
  0x59   : > { %v388_v48 = vadd.f32 %v387_v38, %v386_v42  ;;  %v428_v50 = vmul.f32 %v292_v20, %v292_v20  ;;  %v445_v53 = vsel %vm193_vm0, %v426_v3, 0.0  ;;  %v307_v54 = vmul.f32 %v291_v51, %v951_v33 }
  0x5a   : > { %v368_v17 = vmul.f32 %v972_v15, %v972_v15  ;;  %v391_v56 = vsel %vm193_vm0, %v366_v23, 0.0  ;;  %v444_v57 = vadd.f32 %v443_v44, %v442_v61  ;;  %v324_v21 = vadd.f32 %v323_v45, %v322_v41 }
  0x5b   : > { %v390_v28 = vadd.f32 %v389_v13, %v388_v48  ;;  %v429_v59 = vmul.f32 %v1008_v16, %v1008_v16  ;;  %v447_v58 = vsel %vm193_vm0, %v427_v55, 0.0  ;;  %v325_v34 = vsel %vm193_vm0, %v306_v29, 0.0 }
  0x5c   : > { %v369_v62 = vmul.f32 %v981_v43, %v981_v43  ;;  %v393_v33 = vsel %vm193_vm0, %v367_v12, 0.0  ;;  %v446_v51 = vadd.f32 %v445_v53, %v444_v57  ;;  %v1059_v63 = vsub.f32 %v903_v4, %v947_v26 }
  0x5d   : > { %v392_v5 = vadd.f32 %v391_v56, %v390_v28  ;;  %v430_v6 = vmul.f32 %v1017_v60, %v1017_v60  ;;  %v449_v9 = vsel %vm193_vm0, %v428_v50, 0.0  ;;  %v308_v11 = vmul.f32 %v292_v20, %v954_v35 }
  0x5e   : > { %v370_v18 = vmul.f32 %v984_v49, %v984_v49  ;;  %v395_v19 = vsel %vm193_vm0, %v368_v17, 0.0  ;;  %v448_v22 = vadd.f32 %v447_v58, %v446_v51  ;;  %v326_v29 = vadd.f32 %v325_v34, %v324_v21 }
  0x5f   : > { %v394_v46 = vadd.f32 %v393_v33, %v392_v5  ;;  %v431_v4 = vmul.f32 %v1021_v40, %v1021_v40  ;;  %v451_v30 = vsel %vm193_vm0, %v429_v59, 0.0  ;;  %v327_v36 = vsel %vm193_vm0, %v307_v54, 0.0 }
  0x60   : > { %v371_v52 = vmul.f32 %v991_v47, %v991_v47  ;;  %v397_v35 = vsel %vm193_vm0, %v369_v62, 0.0  ;;  %v450_v20 = vadd.f32 %v449_v9, %v448_v22  ;;  %v298_v3 = vsub.f32 %v913_v14, %v947_v26 }
  0x61   : > { %v396_v25 = vadd.f32 %v395_v19, %v394_v46  ;;  %v432_v31 = vmul.f32 %v1043_v8, %v1043_v8  ;;  %v453_v23 = vsel %vm193_vm0, %v430_v6, 0.0  ;;  %v299_v38 = vsub.f32 %v923_v24, %v947_v26 }
  0x62   : > { %v399_v37 = vsel %vm193_vm0, %v370_v18, 0.0  ;;  %v452_v27 = vadd.f32 %v451_v30, %v450_v20  ;;  %v328_v41 = vadd.f32 %v327_v36, %v326_v29  ;;  %v433_v55 = vmul.f32 %v1059_v63, %v1059_v63 }
  0x63   : > { %v398_v42 = vadd.f32 %v397_v35, %v396_v25  ;;  %v455_v44 = vsel %vm193_vm0, %v431_v4, 0.0  ;;  %v309_v14 = vmul.f32 %v1008_v16, %v957_v0  ;;  %v329_v45 = vsel %vm193_vm0, %v308_v11, 0.0 }
  0x64   : > { %v401_v12 = vsel %vm193_vm0, %v371_v52, 0.0  ;;  %v454_v13 = vadd.f32 %v453_v23, %v452_v27  ;;  %v300_v24 = vsub.f32 %v930_v32, %v947_v26  ;;  %v434_v48 = vmul.f32 %v298_v3, %v298_v3 }
  0x65   : > { %v400_v61 = vadd.f32 %v399_v37, %v398_v42  ;;  %v457_v50 = vsel %vm193_vm0, %v432_v31, 0.0  ;;  %v301_v53 = vsub.f32 %v937_v39, %v947_v26  ;;  %v330_v17 = vadd.f32 %v329_v45, %v328_v41 }
  0x66   : > { %v456_v54 = vadd.f32 %v455_v44, %v454_v13  ;;  %v435_v57 = vmul.f32 %v299_v38, %v299_v38  ;;  %v459_v0 = vsel %vm193_vm0, %v433_v55, 0.0  ;;  %v310_v16 = vmul.f32 %v1017_v60, %v960_v1 }
  0x67   : > { %v402_v56 = vadd.f32 %v401_v12, %v400_v61  ;;  %v331_v21 = vsel %vm193_vm0, %v309_v14, 0.0  ;;  %v436_v59 = vmul.f32 %v300_v24, %v300_v24  ;;  %v461_v58 = vsel %vm193_vm0, %v434_v48, 0.0 }
  0x68   : > { %v458_v28 = vadd.f32 %v457_v50, %v456_v54  ;;  %v332_v62 = vadd.f32 %v331_v21, %v330_v17  ;;  %v437_v39 = vmul.f32 %v301_v53, %v301_v53  ;;  %v463_v26 = vsel %vm193_vm0, %v435_v57, 0.0 }
  0x69   : > { %v403_v32 = vrot.slane %v402_v56, 4  ;;  %v311_v51 = vmul.f32 %v1021_v40, %v963_v2  ;;  %v333_v5 = vsel %vm193_vm0, %v310_v16, 0.0  ;;  %v465_v60 = vsel %vm193_vm0, %v436_v59, 0.0 }
  0x6a   : > { %v460_v34 = vadd.f32 %v459_v0, %v458_v28  ;;  %v334_v11 = vadd.f32 %v333_v5, %v332_v62  ;;  %v467_v19 = vsel %vm193_vm0, %v437_v39, 0.0  ;;  %v312_v22 = vmul.f32 %v1043_v8, %v966_v7 }
  0x6b   : > { %v404_v33 = vadd.f32 %v403_v32, %v402_v56  ;;  %v335_v29 = vsel %vm193_vm0, %v311_v51, 0.0  ;;  %v313_v36 = vmul.f32 %v1059_v63, %v969_v10  ;;  %v314_v23 = vmul.f32 %v298_v3, %v972_v15 }
  0x6c   : > { %v462_v6 = vadd.f32 %v461_v58, %v460_v34  ;;  %v336_v2 = vadd.f32 %v335_v29, %v334_v11  ;;  %v337_v52 = vsel %vm193_vm0, %v312_v22, 0.0  ;;  %v315_v41 = vmul.f32 %v299_v38, %v981_v43 }
  0x6d   : > { %v405_v1 = vrot.slane %v404_v33, 2  ;;  %v339_v7 = vsel %vm193_vm0, %v313_v36, 0.0  ;;  %v341_v42 = vsel %vm193_vm0, %v314_v23, 0.0  ;;  %v316_v45 = vmul.f32 %v300_v24, %v984_v49 }
  0x6e   : > { %v464_v9 = vadd.f32 %v463_v26, %v462_v6  ;;  %v338_v31 = vadd.f32 %v337_v52, %v336_v2  ;;  %v343_v12 = vsel %vm193_vm0, %v315_v41, 0.0  ;;  %v317_v48 = vmul.f32 %v301_v53, %v991_v47 }
  0x6f   : > { %v406_v18 = vadd.f32 %v405_v1, %v404_v33  ;;  %v345_v43 = vsel %vm193_vm0, %v316_v45, 0.0 }
  0x70   : > { %v466_v46 = vadd.f32 %v465_v60, %v464_v9  ;;  %v340_v27 = vadd.f32 %v339_v7, %v338_v31  ;;  %v347_v17 = vsel %vm193_vm0, %v317_v48, 0.0 }
  0x71   : > { %v407_v4 = vrot.slane %v406_v18, 1 }
  0x72   : > { %v468_v30 = vadd.f32 %v467_v19, %v466_v46  ;;  %v342_v14 = vadd.f32 %v341_v42, %v340_v27 }
  0x73   : > { %v408_v40 = vadd.f32 %v407_v4, %v406_v18 }
  0x74   : > { %v469_v35 = vrot.slane %v468_v30, 4  ;;  %v344_v61 = vadd.f32 %v343_v12, %v342_v14 }
  0x75   : > { %v409_v20 = vmul.f32 0.0078125, %v408_v40 }
  0x76   : > { %v470_v25 = vadd.f32 %v469_v35, %v468_v30  ;;  %v346_v50 = vadd.f32 %v345_v43, %v344_v61 }
  0x77   : > { %638 = vrsqrt.f32 %v409_v20  ;;  %vm417_vm1 = vcmp.eq.f32.partialorder %v409_v20, inf  ;;  %v420_v32 = vand.u32 2147483648, %v409_v20  ;;  %vm419_vm2 = vcmp.eq.f32.partialorder %v409_v20, 0.0 }
  0x78   : > { %v471_v8 = vrot.slane %v470_v25, 2  ;;  %v348_v0 = vadd.f32 %v347_v17, %v346_v50 }
  0x7a   : > { %v472_v37 = vadd.f32 %v471_v8, %v470_v25  ;;  %v349_v21 = vrot.slane %v348_v0, 4 }
  0x7c   : > { %v473_v55 = vrot.slane %v472_v37, 1  ;;  %v350_v58 = vadd.f32 %v349_v21, %v348_v0 }
  0x7d   : > { %v639_v10 = vpop.eup %638 }
  0x7e   : > { %v411_v63 = vmul.f32 %v639_v10, %v409_v20  ;;  %v474_v44 = vadd.f32 %v473_v55, %v472_v37  ;;  %v351_v26 = vrot.slane %v350_v58, 2 }
  0x80   : > { %v412_v13 = vmul.f32 %v639_v10, %v411_v63  ;;  %v475_v15 = vmul.f32 0.0078125, %v474_v44  ;;  %v352_v6 = vadd.f32 %v351_v26, %v350_v58 }
  0x82   : > { %v413_v3 = vmul.f32 0.5, %v412_v13  ;;  %640 = vrsqrt.f32 %v475_v15  ;;  %vm483_vm3 = vcmp.eq.f32.partialorder %v475_v15, inf  ;;  %v486_v53 = vand.u32 2147483648, %v475_v15 }
  0x83   : > { %vm485_vm4 = vcmp.eq.f32.partialorder %v475_v15, 0.0  ;;  %v353_v1 = vrot.slane %v352_v6, 1 }
  0x84   : > { %v414_v38 = vsub.f32 1.5, %v413_v3 }
  0x85   : > { %v354_v11 = vadd.f32 %v353_v1, %v352_v6 }
  0x86   : > { %v415_v56 = vmul.f32 %v639_v10, %v414_v38 }
  0x87   : > { %v355_v4 = vmul.f32 0.0078125, %v354_v11 }
  0x88   : > { %v641_v54 = vpop.eup %640  ;;  %v416_v24 = vmul.f32 %v415_v56, %v409_v20 }
  0x89   : > { %v477_v57 = vmul.f32 %v641_v54, %v475_v15 }
  0x8a   : > { %v418_v59 = vsel %vm417_vm1, %v409_v20, %v416_v24 }
  0x8b   : > { %v478_v49 = vmul.f32 %v641_v54, %v477_v57  ;;  %v421_v62 = vsel %vm419_vm2, %v420_v32, %v418_v59 }
  0x8d   : > { %v479_v16 = vmul.f32 0.5, %v478_v49 }
  0x8f   : > { %v480_v28 = vsub.f32 1.5, %v479_v16 }
  0x91   : > { %v481_v47 = vmul.f32 %v641_v54, %v480_v28 }
  0x93   : > { %v482_v34 = vmul.f32 %v481_v47, %v475_v15 }
  0x95   : > { %v484_v33 = vsel %vm483_vm3, %v475_v15, %v482_v34 }
  0x96   : > { %v487_v39 = vsel %vm485_vm4, %v486_v53, %v484_v33 }
  0x97   : > { %v488_v51 = vmul.f32 %v487_v39, %v421_v62 }
  0x99   : > { %v489_v5 = vmax.f32 %v488_v51, 1.1754944e-38 }
  0x9b   : > { %642 = vrcp.f32 %v489_v5  ;;  %v501_v18 = vand.u32 2147483648, %v489_v5  ;;  %vm495_vm5 = vweird.f32 %v489_v5  ;;  %v499_v22 = vand.u32 2147483647, %v489_v5 }
  0x9d   : > { %v502_v46 = vor.u32 1.1754944e-38, %v501_v18  ;;  %vm500_vm8 = vcmp.eq.f32.partialorder %v499_v22, 8.507059e+37 }
  0xa1   : > { %v643_v60 = vpop.eup %642 }
  0xa2   : > { %v491_v9 = vmul.f32 %v643_v60, %v489_v5  ;;  %vm496_vm6 = vweird.f32 %v643_v60 }
  0xa3   : > { %vm497_vm7 = vmor %vm495_vm5, %vm496_vm6 }
  0xa4   : > { %v492_v19 = vsub.f32 1.0, %v491_v9 }
  0xa6   : > { %v493_v29 = vmul.f32 %v643_v60, %v492_v19 }
  0xa8   : > { %v494_v30 = vadd.f32 %v643_v60, %v493_v29 }
  0xaa   : > { %v498_v2 = vsel %vm497_vm7, %v643_v60, %v494_v30 }
  0xab   : > { %v503_v40 = vsel %vm500_vm8, %v502_v46, %v498_v2 }
  0xac   : > { %v504_v36 = vmul.f32 %v503_v40, %v355_v4 }
  0xae   : > { %506 = vst.msk [vmem:[%s150_s5] sm:$0x1] %vm505_vm9, %v504_v36 }
  0xaf   : > { %671 = shalt.err (!%p668_p3)
}
  0xb0   : > { %599 = dma.vmem_to_hbm [thread:$0]  (%p761_p5), %s519_s6, 16, %s521_s7, %s508_s8  }
  0xb1 PF: > { %p605_p4 = scmp.ge.s32.totalorder %s706_s12, 2  ;;  %s532_s24 = sand.u32 1, %s694_s9  }
  0xb2   : > { %s533_s25 = scalar_lea.sflag [#allocation3], %s532_s24 }
  0xb3   : > { %p602_p7 = pnand %p605_p4, %p765_p6 }
  0xb5   : > { %p603_p8 = pneg %p602_p7 }
  0xb7   : > { %689 = dma.done.wait (%p603_p8), %s533_s25, 16  }
  0xb8   : > { %691 = vsyncadd (%p603_p8), %s533_s25, 4294967280  ;;  %p12_p9 = scmp.ge.s32.totalorder %s748_s15, 4   ;;  %s1158_s9 = smov %s698_s10 }
  0xb9   : > { %s1159_s10 = smov %s702_s11  ;;  %s1160_s11 = smov %s759_s18 }
  0xba   : > { %s1161_s12 = smov %s748_s15  ;;  %14 = sbr.rel (!%p12_p9) target bundleno = 3 (0x3), region = 66 }
  0xbf   :  { %538 = vsyncpa [#allocation3], 1 }
  0xc0   :  { %540 = vsyncpa [#allocation3 + $0x1], 1 }

</bundles_post_ra>
